<compile_context>
chip_gen: v7x
topology: tpu7x:2x2x1
jax: 0.10.0
libtpu: 0.0.40
codegen_flags: <defaults>
</compile_context>

<pallas_src>
import numpy as np
import jax
import jax.numpy as jnp
from jax import lax
from jax.experimental import pallas as pl
from jax.experimental.pallas import tpu as pltpu

EPS = 1e-5
LANE = 128


def _round_up(v, m):
    return ((v + m - 1) // m) * m


def resblock_kernel(x_ref, w1_ref, w2_ref, wr_ref,
                    g1_ref, be1_ref, g2_ref, be2_ref, gr_ref, ber_ref,
                    out_ref):
    N, L, Cp = x_ref.shape
    R = N * L
    Hp = w1_ref.shape[1]
    inv_r = 1.0 / R

    # Per-channel BN params, read once (hoisted broadcasts), shape (1, Hp) f32.
    g1, be1 = g1_ref[...], be1_ref[...]
    g2, be2 = g2_ref[...], be2_ref[...]
    gr, ber = gr_ref[...], ber_ref[...]

    x = x_ref[...].reshape(R, Cp)                     # rows = flattened (N, L)

    def conv3(h, w_ref):
        # k=3, pad=1, stride=1 conv as ONE im2col bf16 matmul on the MXU.
        # Shifted taps via pltpu.roll on the row (sublane) axis; rows that would wrap
        # across a sequence boundary are masked to zero (== the conv's zero padding).
        r, c = h.shape
        l_idx = lax.broadcasted_iota(jnp.int32, (r, c), 0) % L
        prev = jnp.where(l_idx > 0, pltpu.roll(h, 1, axis=0), 0.0)           # row r-1
        nxt = jnp.where(l_idx < L - 1, pltpu.roll(h, r - 1, axis=0), 0.0)    # row r+1
        cat = jnp.concatenate([prev, h, nxt], axis=-1).astype(jnp.bfloat16)  # (R, 3c)
        return jnp.dot(cat, w_ref[...], preferred_element_type=jnp.float32)

    def bn(y, g, be):
        # training-mode BatchNorm1d: batch stats over rows (biased variance), folded
        # into a per-channel scale/shift; sum and sum-of-squares in a single pass.
        s1 = jnp.sum(y, axis=0, keepdims=True) * inv_r          # E[y]
        s2 = jnp.sum(y * y, axis=0, keepdims=True) * inv_r      # E[y^2]
        scale = g * lax.rsqrt(s2 - s1 * s1 + EPS)               # gamma / sqrt(var + eps)
        shift = be - s1 * scale                                 # beta - mean * scale
        return y * scale + shift

    # Main path.  Conv biases are omitted: BN(y + b) == BN(y) in training mode
    # (the bias shifts the batch mean by exactly b and leaves the variance unchanged).
    h = jnp.maximum(bn(conv3(x, w1_ref), g1, be1), 0.0)
    y = bn(conv3(h, w2_ref), g2, be2)

    # Residual path: 1x1 conv (stride=1) + BN.
    res = jnp.dot(x.astype(jnp.bfloat16), wr_ref[...],
                  preferred_element_type=jnp.float32)
    res = bn(res, gr, ber)

    out_ref[...] = jnp.maximum(y + res, 0.0).reshape(N, L, Hp)


def pack_params(p, num_ins, hidden):
    """Wrapper-side packing: pad channels to 128 lanes, pre-pack the conv weights for the
    fused im2col matmul (bf16), and pad the BN affine params (f32)."""
    cin_p = _round_up(num_ins, LANE)
    h_p = _round_up(hidden, LANE)

    def pack_conv3(w_t, in_dim, in_p):                 # torch layout (Cout, Cin, 3)
        w = jnp.transpose(w_t, (2, 1, 0))              # (3, Cin, Cout)
        w = jnp.pad(w, ((0, 0), (0, in_p - in_dim), (0, h_p - hidden)))
        return w.reshape(3 * in_p, h_p).astype(jnp.bfloat16)

    def pad_vec(v):
        return jnp.pad(v.reshape(1, -1), ((0, 0), (0, h_p - hidden))).astype(jnp.float32)

    wr = jnp.transpose(p["wr"][:, :, 0], (1, 0))       # (Cin, Cout)
    wr = jnp.pad(wr, ((0, cin_p - num_ins), (0, h_p - hidden))).astype(jnp.bfloat16)

    kp = dict(
        w1=pack_conv3(p["w1"], num_ins, cin_p),
        w2=pack_conv3(p["w2"], hidden, h_p),
        wr=wr,
        g1=pad_vec(p["g1"]), be1=pad_vec(p["be1"]),
        g2=pad_vec(p["g2"]), be2=pad_vec(p["be2"]),
        gr=pad_vec(p["gr"]), ber=pad_vec(p["ber"]),
    )
    return kp, cin_p, h_p


def resblock_forward(x_nlc, p):
    N, L, Cin = x_nlc.shape
    H = p["w1"].shape[0]
    kp, Cp, Hp = pack_params(p, Cin, H)
    xp = jnp.pad(x_nlc.astype(jnp.float32), ((0, 0), (0, 0), (0, Cp - Cin)))

    # Single-block design: all activations resident in VMEM (fine for small N*L*C).
    # TODO(synk): tiled two-pass grid for large N*L (keeps BN stats global) + Cout-parallel axis.
    live_bytes = 4 * N * L * (6 * Cp + 8 * Hp)   # rough upper bound on live tiles
    assert live_bytes < 24 * 1024 * 1024, "needs the tiled two-pass variant at this size"

    vmem = pl.BlockSpec(memory_space=pltpu.MemorySpace.VMEM)
    out_p = pl.pallas_call(
        resblock_kernel,
        out_shape=jax.ShapeDtypeStruct((N, L, Hp), jnp.float32),
        in_specs=[vmem] * 10,
        out_specs=vmem,
        compiler_params=pltpu.CompilerParams(vmem_limit_bytes=32 * 1024 * 1024),
    )(xp, kp["w1"], kp["w2"], kp["wr"],
      kp["g1"], kp["be1"], kp["g2"], kp["be2"], kp["gr"], kp["ber"])
    return out_p[:, :, :H]                       # drop the zero-padded output channels


def init_params(key, num_ins, hidden):
    ks = jax.random.split(key, 12)

    def u(k, shape, scale):
        return (jax.random.uniform(k, shape, jnp.float32) - 0.5) * 2.0 * scale

    # PyTorch layouts: conv weight (Cout, Cin, K); conv bias / BN weight / BN bias (C,)
    return dict(
        w1=u(ks[0], (hidden, num_ins, 3), 0.3), b1=u(ks[1], (hidden,), 0.1),
        w2=u(ks[2], (hidden, hidden, 3), 0.1), b2=u(ks[3], (hidden,), 0.1),
        wr=u(ks[4], (hidden, num_ins, 1), 0.3), br=u(ks[5], (hidden,), 0.1),
        g1=1.0 + u(ks[6], (hidden,), 0.1), be1=u(ks[7], (hidden,), 0.1),
        g2=1.0 + u(ks[8], (hidden,), 0.1), be2=u(ks[9], (hidden,), 0.1),
        gr=1.0 + u(ks[10], (hidden,), 0.1), ber=u(ks[11], (hidden,), 0.1),
    )


def ref_forward(x_nlc, p):
    # Pure-JAX f32 reference mirroring the PyTorch forward (same channels-last layout),
    # with conv biases included (they cancel inside training-mode BN).
    def conv3(h, w_t, b):                         # w_t: (Cout, Cin, 3)
        n, l, c = h.shape
        hp = jnp.pad(h, ((0, 0), (1, 1), (0, 0)))
        y = sum(jnp.einsum('nlc,hc->nlh', hp[:, k:k + l, :], w_t[:, :, k]) for k in range(3))
        return y + b.reshape(1, 1, -1)

    def bn(y, g, be):
        mean = y.mean(axis=(0, 1), keepdims=True)
        var = ((y - mean) ** 2).mean(axis=(0, 1), keepdims=True)
        return (y - mean) / jnp.sqrt(var + EPS) * g.reshape(1, 1, -1) + be.reshape(1, 1, -1)

    h = jax.nn.relu(bn(conv3(x_nlc, p["w1"], p["b1"]), p["g1"], p["be1"]))
    y = bn(conv3(h, p["w2"], p["b2"]), p["g2"], p["be2"])
    res = jnp.einsum('nlc,hc->nlh', x_nlc, p["wr"][:, :, 0]) + p["br"].reshape(1, 1, -1)
    res = bn(res, p["gr"], p["ber"])
    return jax.nn.relu(y + res)


if __name__ == "__main__":
    key = jax.random.PRNGKey(0)
    kx, kparam = jax.random.split(key)

    # num_ins=4, hidden_size=32, stride=1 -> residual 1x1-conv path is active
    N, Cin, L, H = 2, 4, 16, 32
    x_ncl = jax.random.normal(kx, (N, Cin, L), jnp.float32)   # PyTorch-style (N, C, L) input
    x_nlc = jnp.transpose(x_ncl, (0, 2, 1))                   # kernel layout (N, L, C)
    params = init_params(kparam, Cin, H)

    out = jax.block_until_ready(resblock_forward(x_nlc, params))
    ref = ref_forward(x_nlc, params)

    assert out.shape == (N, L, H)
    # bf16 MXU operands vs. the f32 reference -> slightly relaxed tolerance (per review note)
    np.testing.assert_allclose(np.asarray(out), np.asarray(ref), rtol=2e-2, atol=2e-2)

    print("KERNEL_OK")
</pallas_src>

<mosaic_0001>
module attributes {stable_mosaic.version = 11 : i64} {
  func.func @resblock_kernel(%arg0: memref<2x16x128xf32, #tpu.memory_space<vmem>>, %arg1: memref<384x128xbf16, #tpu.memory_space<vmem>>, %arg2: memref<384x128xbf16, #tpu.memory_space<vmem>>, %arg3: memref<128x128xbf16, #tpu.memory_space<vmem>>, %arg4: memref<1x128xf32, #tpu.memory_space<vmem>>, %arg5: memref<1x128xf32, #tpu.memory_space<vmem>>, %arg6: memref<1x128xf32, #tpu.memory_space<vmem>>, %arg7: memref<1x128xf32, #tpu.memory_space<vmem>>, %arg8: memref<1x128xf32, #tpu.memory_space<vmem>>, %arg9: memref<1x128xf32, #tpu.memory_space<vmem>>, %arg10: memref<2x16x128xf32, #tpu.memory_space<vmem>>) attributes {dimension_semantics = [], scalar_prefetch = 0 : i64, scratch_operands = 0 : i64, tpu.core_type = #tpu.core_type<tc>} {
    %c0 = arith.constant 0 : index
    %c0_0 = arith.constant 0 : index
    %0 = vector.load %arg4[%c0, %c0_0] : memref<1x128xf32, #tpu.memory_space<vmem>>, vector<1x128xf32>
    %c0_1 = arith.constant 0 : index
    %c0_2 = arith.constant 0 : index
    %1 = vector.load %arg5[%c0_1, %c0_2] : memref<1x128xf32, #tpu.memory_space<vmem>>, vector<1x128xf32>
    %c0_3 = arith.constant 0 : index
    %c0_4 = arith.constant 0 : index
    %2 = vector.load %arg6[%c0_3, %c0_4] : memref<1x128xf32, #tpu.memory_space<vmem>>, vector<1x128xf32>
    %c0_5 = arith.constant 0 : index
    %c0_6 = arith.constant 0 : index
    %3 = vector.load %arg7[%c0_5, %c0_6] : memref<1x128xf32, #tpu.memory_space<vmem>>, vector<1x128xf32>
    %c0_7 = arith.constant 0 : index
    %c0_8 = arith.constant 0 : index
    %4 = vector.load %arg8[%c0_7, %c0_8] : memref<1x128xf32, #tpu.memory_space<vmem>>, vector<1x128xf32>
    %c0_9 = arith.constant 0 : index
    %c0_10 = arith.constant 0 : index
    %5 = vector.load %arg9[%c0_9, %c0_10] : memref<1x128xf32, #tpu.memory_space<vmem>>, vector<1x128xf32>
    %c0_11 = arith.constant 0 : index
    %c0_12 = arith.constant 0 : index
    %c0_13 = arith.constant 0 : index
    %6 = vector.load %arg0[%c0_11, %c0_12, %c0_13] : memref<2x16x128xf32, #tpu.memory_space<vmem>>, vector<2x16x128xf32>
    %7 = vector.shape_cast %6 : vector<2x16x128xf32> to vector<32x128xf32>
    %8 = tpu.iota {dimensions = array<i32: 0>} : vector<32x128xi32>
    %c16_i32 = arith.constant 16 : i32
    %c0_i32 = arith.constant 0 : i32
    %9 = arith.cmpi eq, %c16_i32, %c0_i32 : i32
    %c1_i32 = arith.constant 1 : i32
    %10 = arith.select %9, %c1_i32, %c16_i32 : i32
    %11 = vector.broadcast %10 : i32 to vector<32x128xi32>
    %12 = arith.remsi %8, %11 : vector<32x128xi32>
    %c0_i32_14 = arith.constant 0 : i32
    %13 = vector.broadcast %c0_i32_14 : i32 to vector<32x128xi32>
    %14 = arith.cmpi ne, %12, %13 : vector<32x128xi32>
    %c0_i32_15 = arith.constant 0 : i32
    %15 = vector.broadcast %c0_i32_15 : i32 to vector<32x128xi32>
    %16 = arith.cmpi slt, %12, %15 : vector<32x128xi32>
    %c0_i32_16 = arith.constant 0 : i32
    %17 = arith.cmpi slt, %10, %c0_i32_16 : i32
    %18 = vector.broadcast %17 : i1 to vector<32x128xi1>
    %19 = vector.broadcast %18 : vector<32x128xi1> to vector<32x128xi1>
    %20 = arith.xori %16, %19 : vector<32x128xi1>
    %21 = arith.andi %20, %14 : vector<32x128xi1>
    %22 = vector.broadcast %10 : i32 to vector<32x128xi32>
    %23 = arith.addi %12, %22 : vector<32x128xi32>
    %24 = arith.select %21, %23, %12 : vector<32x128xi1>, vector<32x128xi32>
    %c0_i32_17 = arith.constant 0 : i32
    %25 = vector.broadcast %c0_i32_17 : i32 to vector<32x128xi32>
    %26 = arith.cmpi sgt, %24, %25 : vector<32x128xi32>
    %c1_i32_18 = arith.constant 1 : i32
    %27 = tpu.dynamic_rotate %7 by %c1_i32_18 dim 0 : vector<32x128xf32>, i32 -> vector<32x128xf32>
    %cst = arith.constant 0.000000e+00 : f32
    %28 = vector.broadcast %cst : f32 to vector<32x128xf32>
    %29 = arith.select %26, %27, %28 : vector<32x128xi1>, vector<32x128xf32>
    %c15_i32 = arith.constant 15 : i32
    %30 = vector.broadcast %c15_i32 : i32 to vector<32x128xi32>
    %31 = arith.cmpi slt, %24, %30 : vector<32x128xi32>
    %c31_i32 = arith.constant 31 : i32
    %32 = tpu.dynamic_rotate %7 by %c31_i32 dim 0 : vector<32x128xf32>, i32 -> vector<32x128xf32>
    %cst_19 = arith.constant 0.000000e+00 : f32
    %33 = vector.broadcast %cst_19 : f32 to vector<32x128xf32>
    %34 = arith.select %31, %32, %33 : vector<32x128xi1>, vector<32x128xf32>
    %35 = tpu.concatenate %29, %7, %34 in 1 : vector<32x128xf32>, vector<32x128xf32>, vector<32x128xf32> -> vector<32x384xf32>
    %36 = arith.truncf %35 : vector<32x384xf32> to vector<32x384xbf16>
    %c0_20 = arith.constant 0 : index
    %c0_21 = arith.constant 0 : index
    %37 = vector.load %arg1[%c0_20, %c0_21] : memref<384x128xbf16, #tpu.memory_space<vmem>>, vector<384x128xbf16>
    %cst_22 = arith.constant dense<0.000000e+00> : vector<32x128xf32>
    %38 = tpu.matmul %36, %37, %cst_22 {dimension_numbers = #tpu.dot_dimension_numbers<[1], [0], [0], [1], [0, 0, 1, 1], [], []>} : vector<32x384xbf16>, vector<384x128xbf16>, vector<32x128xf32> -> vector<32x128xf32>
    %cst_23 = arith.constant dense<0.000000e+00> : vector<128xf32>
    %39 = vector.multi_reduction <add>, %38, %cst_23 [0] : vector<32x128xf32> to vector<128xf32>
    %40 = vector.shape_cast %39 : vector<128xf32> to vector<1x128xf32>
    %cst_24 = arith.constant 3.125000e-02 : f32
    %41 = vector.broadcast %cst_24 : f32 to vector<1x128xf32>
    %42 = arith.mulf %40, %41 : vector<1x128xf32>
    %43 = arith.mulf %38, %38 : vector<32x128xf32>
    %cst_25 = arith.constant dense<0.000000e+00> : vector<128xf32>
    %44 = vector.multi_reduction <add>, %43, %cst_25 [0] : vector<32x128xf32> to vector<128xf32>
    %45 = vector.shape_cast %44 : vector<128xf32> to vector<1x128xf32>
    %cst_26 = arith.constant 3.125000e-02 : f32
    %46 = vector.broadcast %cst_26 : f32 to vector<1x128xf32>
    %47 = arith.mulf %45, %46 : vector<1x128xf32>
    %48 = arith.mulf %42, %42 : vector<1x128xf32>
    %49 = arith.subf %47, %48 : vector<1x128xf32>
    %cst_27 = arith.constant 9.99999974E-6 : f32
    %50 = vector.broadcast %cst_27 : f32 to vector<1x128xf32>
    %51 = arith.addf %49, %50 : vector<1x128xf32>
    %52 = math.rsqrt %51 : vector<1x128xf32>
    %53 = arith.mulf %0, %52 : vector<1x128xf32>
    %54 = arith.mulf %42, %53 : vector<1x128xf32>
    %55 = arith.subf %1, %54 : vector<1x128xf32>
    %56 = vector.broadcast %53 : vector<1x128xf32> to vector<32x128xf32>
    %57 = arith.mulf %38, %56 : vector<32x128xf32>
    %58 = vector.broadcast %55 : vector<1x128xf32> to vector<32x128xf32>
    %59 = arith.addf %57, %58 : vector<32x128xf32>
    %cst_28 = arith.constant 0.000000e+00 : f32
    %60 = vector.broadcast %cst_28 : f32 to vector<32x128xf32>
    %61 = arith.maximumf %59, %60 : vector<32x128xf32>
    %62 = tpu.iota {dimensions = array<i32: 0>} : vector<32x128xi32>
    %c16_i32_29 = arith.constant 16 : i32
    %c0_i32_30 = arith.constant 0 : i32
    %63 = arith.cmpi eq, %c16_i32_29, %c0_i32_30 : i32
    %c1_i32_31 = arith.constant 1 : i32
    %64 = arith.select %63, %c1_i32_31, %c16_i32_29 : i32
    %65 = vector.broadcast %64 : i32 to vector<32x128xi32>
    %66 = arith.remsi %62, %65 : vector<32x128xi32>
    %c0_i32_32 = arith.constant 0 : i32
    %67 = vector.broadcast %c0_i32_32 : i32 to vector<32x128xi32>
    %68 = arith.cmpi ne, %66, %67 : vector<32x128xi32>
    %c0_i32_33 = arith.constant 0 : i32
    %69 = vector.broadcast %c0_i32_33 : i32 to vector<32x128xi32>
    %70 = arith.cmpi slt, %66, %69 : vector<32x128xi32>
    %c0_i32_34 = arith.constant 0 : i32
    %71 = arith.cmpi slt, %64, %c0_i32_34 : i32
    %72 = vector.broadcast %71 : i1 to vector<32x128xi1>
    %73 = vector.broadcast %72 : vector<32x128xi1> to vector<32x128xi1>
    %74 = arith.xori %70, %73 : vector<32x128xi1>
    %75 = arith.andi %74, %68 : vector<32x128xi1>
    %76 = vector.broadcast %64 : i32 to vector<32x128xi32>
    %77 = arith.addi %66, %76 : vector<32x128xi32>
    %78 = arith.select %75, %77, %66 : vector<32x128xi1>, vector<32x128xi32>
    %c0_i32_35 = arith.constant 0 : i32
    %79 = vector.broadcast %c0_i32_35 : i32 to vector<32x128xi32>
    %80 = arith.cmpi sgt, %78, %79 : vector<32x128xi32>
    %c1_i32_36 = arith.constant 1 : i32
    %81 = tpu.dynamic_rotate %61 by %c1_i32_36 dim 0 : vector<32x128xf32>, i32 -> vector<32x128xf32>
    %cst_37 = arith.constant 0.000000e+00 : f32
    %82 = vector.broadcast %cst_37 : f32 to vector<32x128xf32>
    %83 = arith.select %80, %81, %82 : vector<32x128xi1>, vector<32x128xf32>
    %c15_i32_38 = arith.constant 15 : i32
    %84 = vector.broadcast %c15_i32_38 : i32 to vector<32x128xi32>
    %85 = arith.cmpi slt, %78, %84 : vector<32x128xi32>
    %c31_i32_39 = arith.constant 31 : i32
    %86 = tpu.dynamic_rotate %61 by %c31_i32_39 dim 0 : vector<32x128xf32>, i32 -> vector<32x128xf32>
    %cst_40 = arith.constant 0.000000e+00 : f32
    %87 = vector.broadcast %cst_40 : f32 to vector<32x128xf32>
    %88 = arith.select %85, %86, %87 : vector<32x128xi1>, vector<32x128xf32>
    %89 = tpu.concatenate %83, %61, %88 in 1 : vector<32x128xf32>, vector<32x128xf32>, vector<32x128xf32> -> vector<32x384xf32>
    %90 = arith.truncf %89 : vector<32x384xf32> to vector<32x384xbf16>
    %c0_41 = arith.constant 0 : index
    %c0_42 = arith.constant 0 : index
    %91 = vector.load %arg2[%c0_41, %c0_42] : memref<384x128xbf16, #tpu.memory_space<vmem>>, vector<384x128xbf16>
    %cst_43 = arith.constant dense<0.000000e+00> : vector<32x128xf32>
    %92 = tpu.matmul %90, %91, %cst_43 {dimension_numbers = #tpu.dot_dimension_numbers<[1], [0], [0], [1], [0, 0, 1, 1], [], []>} : vector<32x384xbf16>, vector<384x128xbf16>, vector<32x128xf32> -> vector<32x128xf32>
    %cst_44 = arith.constant dense<0.000000e+00> : vector<128xf32>
    %93 = vector.multi_reduction <add>, %92, %cst_44 [0] : vector<32x128xf32> to vector<128xf32>
    %94 = vector.shape_cast %93 : vector<128xf32> to vector<1x128xf32>
    %cst_45 = arith.constant 3.125000e-02 : f32
    %95 = vector.broadcast %cst_45 : f32 to vector<1x128xf32>
    %96 = arith.mulf %94, %95 : vector<1x128xf32>
    %97 = arith.mulf %92, %92 : vector<32x128xf32>
    %cst_46 = arith.constant dense<0.000000e+00> : vector<128xf32>
    %98 = vector.multi_reduction <add>, %97, %cst_46 [0] : vector<32x128xf32> to vector<128xf32>
    %99 = vector.shape_cast %98 : vector<128xf32> to vector<1x128xf32>
    %cst_47 = arith.constant 3.125000e-02 : f32
    %100 = vector.broadcast %cst_47 : f32 to vector<1x128xf32>
    %101 = arith.mulf %99, %100 : vector<1x128xf32>
    %102 = arith.mulf %96, %96 : vector<1x128xf32>
    %103 = arith.subf %101, %102 : vector<1x128xf32>
    %cst_48 = arith.constant 9.99999974E-6 : f32
    %104 = vector.broadcast %cst_48 : f32 to vector<1x128xf32>
    %105 = arith.addf %103, %104 : vector<1x128xf32>
    %106 = math.rsqrt %105 : vector<1x128xf32>
    %107 = arith.mulf %2, %106 : vector<1x128xf32>
    %108 = arith.mulf %96, %107 : vector<1x128xf32>
    %109 = arith.subf %3, %108 : vector<1x128xf32>
    %110 = vector.broadcast %107 : vector<1x128xf32> to vector<32x128xf32>
    %111 = arith.mulf %92, %110 : vector<32x128xf32>
    %112 = vector.broadcast %109 : vector<1x128xf32> to vector<32x128xf32>
    %113 = arith.addf %111, %112 : vector<32x128xf32>
    %114 = arith.truncf %7 : vector<32x128xf32> to vector<32x128xbf16>
    %c0_49 = arith.constant 0 : index
    %c0_50 = arith.constant 0 : index
    %115 = vector.load %arg3[%c0_49, %c0_50] : memref<128x128xbf16, #tpu.memory_space<vmem>>, vector<128x128xbf16>
    %cst_51 = arith.constant dense<0.000000e+00> : vector<32x128xf32>
    %116 = tpu.matmul %114, %115, %cst_51 {dimension_numbers = #tpu.dot_dimension_numbers<[1], [0], [0], [1], [0, 0, 1, 1], [], []>} : vector<32x128xbf16>, vector<128x128xbf16>, vector<32x128xf32> -> vector<32x128xf32>
    %cst_52 = arith.constant dense<0.000000e+00> : vector<128xf32>
    %117 = vector.multi_reduction <add>, %116, %cst_52 [0] : vector<32x128xf32> to vector<128xf32>
    %118 = vector.shape_cast %117 : vector<128xf32> to vector<1x128xf32>
    %cst_53 = arith.constant 3.125000e-02 : f32
    %119 = vector.broadcast %cst_53 : f32 to vector<1x128xf32>
    %120 = arith.mulf %118, %119 : vector<1x128xf32>
    %121 = arith.mulf %116, %116 : vector<32x128xf32>
    %cst_54 = arith.constant dense<0.000000e+00> : vector<128xf32>
    %122 = vector.multi_reduction <add>, %121, %cst_54 [0] : vector<32x128xf32> to vector<128xf32>
    %123 = vector.shape_cast %122 : vector<128xf32> to vector<1x128xf32>
    %cst_55 = arith.constant 3.125000e-02 : f32
    %124 = vector.broadcast %cst_55 : f32 to vector<1x128xf32>
    %125 = arith.mulf %123, %124 : vector<1x128xf32>
    %126 = arith.mulf %120, %120 : vector<1x128xf32>
    %127 = arith.subf %125, %126 : vector<1x128xf32>
    %cst_56 = arith.constant 9.99999974E-6 : f32
    %128 = vector.broadcast %cst_56 : f32 to vector<1x128xf32>
    %129 = arith.addf %127, %128 : vector<1x128xf32>
    %130 = math.rsqrt %129 : vector<1x128xf32>
    %131 = arith.mulf %4, %130 : vector<1x128xf32>
    %132 = arith.mulf %120, %131 : vector<1x128xf32>
    %133 = arith.subf %5, %132 : vector<1x128xf32>
    %134 = vector.broadcast %131 : vector<1x128xf32> to vector<32x128xf32>
    %135 = arith.mulf %116, %134 : vector<32x128xf32>
    %136 = vector.broadcast %133 : vector<1x128xf32> to vector<32x128xf32>
    %137 = arith.addf %135, %136 : vector<32x128xf32>
    %138 = arith.addf %113, %137 : vector<32x128xf32>
    %cst_57 = arith.constant 0.000000e+00 : f32
    %139 = vector.broadcast %cst_57 : f32 to vector<32x128xf32>
    %140 = arith.maximumf %138, %139 : vector<32x128xf32>
    %141 = vector.shape_cast %140 : vector<32x128xf32> to vector<2x16x128xf32>
    %c0_58 = arith.constant 0 : index
    %c0_59 = arith.constant 0 : index
    %c0_60 = arith.constant 0 : index
    %142 = vector.load %arg10[%c0_58, %c0_59, %c0_60] : memref<2x16x128xf32, #tpu.memory_space<vmem>>, vector<2x16x128xf32>
    tpu.vector_store %arg10[%c0_58, %c0_59, %c0_60], %141 {strides = array<i32>} : memref<2x16x128xf32, #tpu.memory_space<vmem>>, vector<2x16x128xf32>,
    return
  }
}

</mosaic_0001>

<bundles_post_ra>
// kernel: tpu_custom_call.1
= control target key start
LH: loop header
LB: loop body
LE: loop exit
PB: predicated region body
PF: predicated region fallthrough
CT: control target
= control target key end

     0   :  { %15 = vsyncpa [#allocation3], 0  ;;  %s1820_s0 = inlined_call_operand.hbm [shape: f32[2,16,128], index: 0, kind: input, shape index: {}]   ;;  %s1821_s1 = inlined_call_operand.hbm [shape: bf16[384,128], index: 1, kind: input, shape index: {}]   ;;  %s1822_s2 = inlined_call_operand.hbm [shape: bf16[384,128], index: 2, kind: input, shape index: {}]   ;;  %s1823_s3 = inlined_call_operand.hbm [shape: bf16[128,128], index: 3, kind: input, shape index: {}]   ;;  %s1824_s4 = inlined_call_operand.vmem [shape: f32[1,128], index: 4, kind: input, shape index: {}]   ;;  %s1825_s5 = inlined_call_operand.vmem [shape: f32[1,128], index: 5, kind: input, shape index: {}]   ;;  %s1826_s6 = inlined_call_operand.vmem [shape: f32[1,128], index: 6, kind: input, shape index: {}]   ;;  %s1827_s7 = inlined_call_operand.vmem [shape: f32[1,128], index: 7, kind: input, shape index: {}]   ;;  %s1828_s8 = inlined_call_operand.vmem [shape: f32[1,128], index: 8, kind: input, shape index: {}]   ;;  %s1829_s9 = inlined_call_operand.vmem [shape: f32[1,128], index: 9, kind: input, shape index: {}]   ;;  %s1830_s10 = inlined_call_operand.hbm [shape: f32[2,16,128], index: 10, kind: output, shape index: {}]  }
   0x1   :  { %16 = vsyncpa [#allocation6], 0 }
   0x2   :  { %17 = vsyncpa [#allocation9], 0 }
   0x3   :  { %18 = vsyncpa [#allocation4], 0  ;;  %s1522_s13 = smov [#allocation5]   ;;  %s1404_s17 = scalar_lea.hbm %s1821_s1, 3072 }
   0x4   :  { %s36_s14 = sshll.u32 %s1522_s13, 4  ;;  %p1405_p0 = scmp.ne.s32.totalorder %s1821_s1, %s1404_s17  ;;  %s37_s14 = int_to_ptr.vmem [resolvable:$true] %s36_s14 }
   0x5   :  { %p1408_p1 = scmp.lt.u32.totalorder %s1404_s17, %s1821_s1 }
   0x7   :  { %p1410_p2 = pnand %p1408_p1, %p1405_p0 }
   0x9   :  { %1413 = shalt.err (!%p1410_p2)
}
   0xa   :  { %s1414_s22 = scalar_lea.vmem %s37_s14, 3072  ;;  %p1419_p4 = scmp.lt.s32.totalorder %s37_s14, %s37_s14 }
   0xb   :  { %p1415_p3 = scmp.ne.s32.totalorder %s37_s14, %s1414_s22  ;;  %p1420_p5 = scmp.lt.s32.totalorder %s1414_s22, %s1414_s22 }
   0xd   :  { %p1421_p6 = por %p1420_p5, %p1419_p4 }
   0xf   :  { %p1422_p7 = pnand %p1421_p6, %p1415_p3 }
  0x11   :  { %1425 = shalt.err (!%p1422_p7)
}
  0x12   :  { %s1523_s23 = smov 64   ;;  %s1524_s24 = smov 4  }
  0x13   :  { %42 = dma.hbm_to_vmem [thread:$0]  %s1821_s1, 3072, %s37_s14, [#allocation6], %s1523_s23, %s1523_s23, %s1524_s24  }
  0x14   :  { %s1525_s27 = smov [#allocation2]   ;;  %s1426_s11 = scalar_lea.hbm %s1820_s0, 512 }
  0x15   :  { %s24_s28 = sshll.u32 %s1525_s27, 4  ;;  %p1427_p8 = scmp.ne.s32.totalorder %s1820_s0, %s1426_s11  ;;  %s25_s28 = int_to_ptr.vmem [resolvable:$true] %s24_s28 }
  0x16   :  { %p1430_p9 = scmp.lt.u32.totalorder %s1426_s11, %s1820_s0 }
  0x18   :  { %p1432_p10 = pnand %p1430_p9, %p1427_p8 }
  0x1a   :  { %1435 = shalt.err (!%p1432_p10)
}
  0x1b   :  { %s1436_s17 = scalar_lea.vmem %s25_s28, 512  ;;  %p1441_p12 = scmp.lt.s32.totalorder %s25_s28, %s25_s28 }
  0x1c   :  { %p1437_p11 = scmp.ne.s32.totalorder %s25_s28, %s1436_s17  ;;  %p1442_p13 = scmp.lt.s32.totalorder %s1436_s17, %s1436_s17 }
  0x1e   :  { %p1443_p0 = por %p1442_p13, %p1441_p12 }
  0x20   :  { %p1444_p1 = pnand %p1443_p0, %p1437_p11 }
  0x22   :  { %1447 = shalt.err (!%p1444_p1)
}
  0x23   :  { %s1526_s1 = smov 128   ;;  %s1527_s14 = smov 8  }
  0x24   :  { %30 = dma.hbm_to_vmem [thread:$0]  %s1820_s0, 512, %s25_s28, [#allocation3], %s1526_s1, %s1526_s1, %s1527_s14  }
  0x25   :  { %s1528_s20 = smov [#allocation7]   ;;  %s1529_s22 = smov [#allocation8]  }
  0x26   :  { %s48_s21 = sshll.u32 %s1528_s20, 4  ;;  %s60_s25 = sshll.u32 %s1529_s22, 4  ;;  %s49_s21 = int_to_ptr.vmem [resolvable:$true] %s48_s21  ;;  %s1617_s25 = int_to_ptr.vmem [resolvable:$true] %s60_s25 }
  0x27   :  { %s1448_s29 = scalar_lea.hbm %s1822_s2, 3072 }
  0x28   :  { %p1449_p2 = scmp.ne.s32.totalorder %s1822_s2, %s1448_s29  ;;  %p1452_p3 = scmp.lt.u32.totalorder %s1448_s29, %s1822_s2 }
  0x2a   :  { %p1454_p4 = pnand %p1452_p3, %p1449_p2 }
  0x2c   :  { %1457 = shalt.err (!%p1454_p4)
}
  0x2d   :  { %s1458_s0 = scalar_lea.vmem %s49_s21, 3072  ;;  %p1463_p6 = scmp.lt.s32.totalorder %s49_s21, %s49_s21 }
  0x2e   :  { %p1459_p5 = scmp.ne.s32.totalorder %s49_s21, %s1458_s0  ;;  %p1464_p7 = scmp.lt.s32.totalorder %s1458_s0, %s1458_s0 }
  0x30   :  { %p1465_p8 = por %p1464_p7, %p1463_p6 }
  0x32   :  { %p1466_p9 = pnand %p1465_p8, %p1459_p5 }
  0x34   :  { %1469 = shalt.err (!%p1466_p9)
}
  0x35   :  { %54 = dma.hbm_to_vmem [thread:$0]  %s1822_s2, 3072, %s49_s21, [#allocation6], %s1523_s23, %s1523_s23, %s1524_s24  }
  0x36   :  { %s1470_s18 = scalar_lea.hbm %s1823_s3, 1024 }
  0x37   :  { %p1471_p10 = scmp.ne.s32.totalorder %s1823_s3, %s1470_s18  ;;  %p1474_p11 = scmp.lt.u32.totalorder %s1470_s18, %s1823_s3 }
  0x39   :  { %p1476_p12 = pnand %p1474_p11, %p1471_p10 }
  0x3b   :  { %1479 = shalt.err (!%p1476_p12)
}
  0x3c   :  { %s1480_s27 = scalar_lea.vmem %s1617_s25, 1024  ;;  %p1485_p0 = scmp.lt.s32.totalorder %s1617_s25, %s1617_s25 }
  0x3d   :  { %p1481_p13 = scmp.ne.s32.totalorder %s1617_s25, %s1480_s27  ;;  %p1486_p1 = scmp.lt.s32.totalorder %s1480_s27, %s1480_s27 }
  0x3f   :  { %p1487_p2 = por %p1486_p1, %p1485_p0 }
  0x41   :  { %p1488_p3 = pnand %p1487_p2, %p1481_p13 }
  0x43   :  { %1491 = shalt.err (!%p1488_p3)
}
  0x44   :  { %66 = dma.hbm_to_vmem [thread:$0]  %s1823_s3, 1024, %s1617_s25, [#allocation9], %s1523_s23, %s1523_s23, %s1524_s24  }
  0x45   :  { %1514 = dma.done.wait [#allocation3], 512  }
  0x46   :  { %1515 = vsyncadd [#allocation3], 4294966784 }
  0x47   :  { %1516 = dma.done.wait [#allocation6], 6144  }
  0x48   :  { %1517 = vsyncadd [#allocation6], 4294961152 }
  0x49   :  { %1518 = dma.done.wait [#allocation9], 1024  }
  0x4a   :  { %1519 = vsyncadd [#allocation9], 4294966272  ;;  %v1342_v0 = vld [vmem:[#allocation5 + $0x40] sm:$0xff]   ;;  %v1345_v3 = vld [vmem:[#allocation5 + $0x48] sm:$0xff]   ;;  %v102_v8 = vlaneseq  ;;  %vm1530_vm5 = vmmov 1  }
  0x4b   :  { %v1343_v1 = vld [vmem:[#allocation5] sm:$0xff]   ;;  %1186 = vmatprep.subr.bf16.mxu0 %v1342_v0  ;;  %v1346_v4 = vld [vmem:[#allocation5 + $0x8] sm:$0xff]   ;;  %v1348_v6 = vld [vmem:[#allocation5 + $0x50] sm:$0xff]  }
  0x4c   :  { %v1344_v2 = vld [vmem:[#allocation5 + $0x80] sm:$0xff]   ;;  %1187 = vmatpush3.bf16.msra.mxu0 %v1343_v1  ;;  %v1347_v5 = vld [vmem:[#allocation5 + $0x88] sm:$0xff]   ;;  %v1349_v7 = vld [vmem:[#allocation5 + $0x10] sm:$0xff]   ;;  %v1654_v13 = vshrl.u32 %v102_v8, 7 }
  0x4d   :  { %1272 = vmatprep.subr.bf16.mxu1 %v1344_v2  ;;  %1188 = vmatprep.subr.bf16.mxu0 %v1345_v3  ;;  %v1350_v9 = vld [vmem:[#allocation5 + $0x90] sm:$0xff]   ;;  %v1351_v10 = vld [vmem:[#allocation5 + $0x58] sm:$0xff]   ;;  %v1354_v14 = vld [vmem:[#allocation5 + $0x60] sm:$0xff]  }
  0x4e   :  { %1273 = vmatpush3.bf16.msra.mxu1 %v1344_v2  ;;  %v1352_v11 = vld [vmem:[#allocation5 + $0x18] sm:$0xff]   ;;  %v1356_v15 = vld [vmem:[#allocation5 + $0xa0] sm:$0xff]   ;;  %v104_v17 = vadd.s32 8, %v1654_v13  ;;  %v1357_v18 = vld [vmem:[#allocation5 + $0x68] sm:$0xff]   ;;  %v106_v19 = vadd.s32 24, %v1654_v13  ;;  %v111_v20 = vand.u32 15, %v1654_v13 }
  0x4f   :  { %1274 = vmatprep.subr.bf16.mxu1 %v1347_v5  ;;  %v1353_v12 = vld [vmem:[#allocation5 + $0x98] sm:$0xff]   ;;  %v1355_v16 = vld [vmem:[#allocation5 + $0x20] sm:$0xff]   ;;  %v1359_v21 = vld [vmem:[#allocation5 + $0xa8] sm:$0xff]   ;;  %v105_v22 = vadd.s32 16, %v1654_v13  ;;  %vm163_vm0 = vcmp.lt.s32.totalorder %v1654_v13, 1  ;;  %vm180_vm1 = vcmp.lt.s32.totalorder %v1654_v13, 7 }
  0x50   :  { %1189 = vmatpush3.bf16.msra.mxu0 %v1346_v4  ;;  %v1358_v23 = vld [vmem:[#allocation5 + $0x28] sm:$0xff]   ;;  %v118_v24 = vand.u32 15, %v104_v17  ;;  %v1360_v25 = vld [vmem:[#allocation5 + $0x70] sm:$0xff]   ;;  %v132_v26 = vand.u32 15, %v106_v19  ;;  %v1363_v29 = vld [vmem:[#allocation5 + $0x78] sm:$0xff]   ;;  %vm1662_vm2 = vcmp.gt.s32.totalorder %v111_v20, 0 }
  0x51   :  { %1190 = vmatprep.subr.bf16.mxu0 %v1348_v6  ;;  %v1361_v27 = vld [vmem:[#allocation5 + $0x30] sm:$0xff]   ;;  %v98_v31 = vld [vmem:[#allocation2] sm:$0xff]  ;;  %v99_v32 = vld [vmem:[#allocation2 + $0x8] sm:$0xff]  ;;  %v125_v36 = vand.u32 15, %v105_v22 }
  0x52   :  { %1275 = vmatpush3.bf16.msra.mxu1 %v1347_v5  ;;  %v1362_v28 = vld [vmem:[#allocation5 + $0xb0] sm:$0xff]   ;;  %v101_v33 = vld [vmem:[#allocation2 + $0x18] sm:$0xff]  ;;  %vm1666_vm3 = vcmp.lt.s32.totalorder %v118_v24, 15  ;;  %vm1670_vm4 = vcmp.lt.s32.totalorder %v132_v26, 15  ;;  %v159_v38 = vrot.slane %v98_v31, 7  ;;  %v160_v39 = vrot.slane %v99_v32, 7  ;;  %vm1679_vm6 = vmpackc.low %vm1530_vm5, %vm1662_vm2 }
  0x53   :  { %1276 = vmatprep.subr.bf16.mxu1 %v1350_v9  ;;  %v1364_v37 = vld [vmem:[#allocation5 + $0x38] sm:$0xff]   ;;  %v176_v40 = vrot.slane %v98_v31, 1  ;;  %v177_v41 = vrot.slane %v99_v32, 1  ;;  %v100_v42 = vld [vmem:[#allocation2 + $0x10] sm:$0xff]  ;;  %v1674_v44 = vpack.c.bf16 %v99_v32, %v98_v31  ;;  %v162_v45 = vrot.slane %v101_v33, 7  ;;  %vm1690_vm7 = vmpackc.low %vm1666_vm3, %vm1530_vm5 }
  0x54   :  { %1191 = vmatpush3.bf16.msra.mxu0 %v1349_v7  ;;  %v1365_v43 = vld [vmem:[#allocation5 + $0xb8] sm:$0xff]   ;;  %v178_v47 = vrot.slane %v100_v42, 1  ;;  %v166_v48 = vsel %vm163_vm0, %v159_v38, %v160_v39  ;;  %v179_v51 = vrot.slane %v101_v33, 1  ;;  %v161_v53 = vrot.slane %v100_v42, 7  ;;  %vm1702_vm8 = vmpackc.low %vm1670_vm4, %vm1530_vm5  ;;  %v1366_v2 = vld [vmem:[#allocation7 + $0x40] sm:$0xff]  }
  0x55   :  { %1192 = vmatprep.subr.bf16.mxu0 %v1351_v10  ;;  %v183_v49 = vsel %vm180_vm1, %v176_v40, %v177_v41  ;;  %419 = vmatprep.mubr.bf16.mxu0 %v1674_v44  ;;  %v167_v52 = vsel %vm163_vm0, %v162_v45, %v159_v38  ;;  %vm157_vm9 = vcmp.gt.s32.totalorder %v125_v36, 0  ;;  %v1712_v60 = vpack.c.bf16 %v101_v33, %v100_v42  ;;  %v1367_v3 = vld [vmem:[#allocation7] sm:$0xff]   ;;  %v1369_v5 = vld [vmem:[#allocation7 + $0x48] sm:$0xff]   ;;  %v1372_v8 = vld [vmem:[#allocation7 + $0x50] sm:$0xff]  }
  0x56   :  { %1277 = vmatpush3.bf16.msra.mxu1 %v1350_v9  ;;  %v182_v54 = vsel %vm180_vm1, %v177_v41, %v178_v47  ;;  %v181_v57 = vsel %vm180_vm1, %v178_v47, %v179_v51  ;;  %v184_v58 = vsel %vm180_vm1, %v179_v51, %v176_v40  ;;  %v1131_v59 = vpack.c.bf16 %v166_v48, %v167_v52  ;;  %vm1715_vm10 = vmpackc.low %vm1530_vm5, %vm157_vm9  ;;  %v1368_v4 = vld [vmem:[#allocation7 + $0x80] sm:$0xff]   ;;  %v1370_v6 = vld [vmem:[#allocation7 + $0x8] sm:$0xff]  }
  0x57   :  { %1278 = vmatprep.subr.bf16.mxu1 %v1353_v12  ;;  %v1137_v56 = vpack.c.bf16 %v182_v54, %v183_v49  ;;  %v1140_v62 = vpack.c.bf16 %v184_v58, %v181_v57  ;;  %v164_v63 = vsel %vm163_vm0, %v161_v53, %v162_v45  ;;  %v165_v0 = vsel %vm163_vm0, %v160_v39, %v161_v53  ;;  %v1371_v7 = vld [vmem:[#allocation7 + $0x88] sm:$0xff]   ;;  %v1373_v9 = vld [vmem:[#allocation7 + $0x10] sm:$0xff]   ;;  %v1380_v17 = vld [vmem:[#allocation7 + $0xa0] sm:$0xff]  }
  0x58   :  { %1193 = vmatpush3.bf16.msra.mxu0 %v1352_v11  ;;  %v1134_v1 = vpack.c.bf16 %v164_v63, %v165_v0  ;;  %v1374_v10 = vld [vmem:[#allocation7 + $0x90] sm:$0xff]   ;;  %v1375_v11 = vld [vmem:[#allocation7 + $0x58] sm:$0xff]   ;;  %v1382_v19 = vld [vmem:[#allocation7 + $0x28] sm:$0xff]  }
  0x59   :  { %1194 = vmatprep.subr.bf16.mxu0 %v1354_v14  ;;  %1288 = vmatprep.mubr.msk.bf16.mxu1 %vm1690_vm7, %v1137_v56  ;;  %v1377_v14 = vld [vmem:[#allocation7 + $0x98] sm:$0xff]   ;;  %v1383_v20 = vld [vmem:[#allocation7 + $0xa8] sm:$0xff]   ;;  %v1385_v22 = vld [vmem:[#allocation7 + $0x30] sm:$0xff]  }
  0x5a   :  { %1279 = vmatpush3.bf16.msra.mxu1 %v1353_v12  ;;  %v1376_v12 = vld [vmem:[#allocation7 + $0x18] sm:$0xff]   ;;  %v1394_v46 = vld [vmem:[#allocation8 + $0x20] sm:$0xff]   ;;  %v1395_v50 = vld [vmem:[#allocation8 + $0x28] sm:$0xff]  }
  0x5b   :  { %1280 = vmatprep.subr.bf16.mxu1 %v1356_v15  ;;  %v1387_v24 = vld [vmem:[#allocation7 + $0x78] sm:$0xff]   ;;  %v1396_v55 = vld [vmem:[#allocation8 + $0x30] sm:$0xff]  }
  0x5c   :  { %1195 = vmatpush3.bf16.msra.mxu0 %v1355_v16  ;;  %v1379_v16 = vld [vmem:[#allocation7 + $0x20] sm:$0xff]   ;;  %v1389_v26 = vld [vmem:[#allocation7 + $0xb8] sm:$0xff]  }
  0x5d   :  { %1196 = vmatprep.subr.bf16.mxu0 %v1357_v18  ;;  %v1381_v18 = vld [vmem:[#allocation7 + $0x68] sm:$0xff]  }
  0x5e   :  { %1281 = vmatpush3.bf16.msra.mxu1 %v1356_v15  ;;  %v1378_v15 = vld [vmem:[#allocation7 + $0x60] sm:$0xff]  }
  0x5f   :  { %1282 = vmatprep.subr.bf16.mxu1 %v1359_v21 }
  0x60   :  { %1197 = vmatpush3.bf16.msra.mxu0 %v1358_v23  ;;  %v1386_v23 = vld [vmem:[#allocation7 + $0xb0] sm:$0xff]  }
  0x61   :  { %1198 = vmatprep.subr.bf16.mxu0 %v1360_v25  ;;  %v1388_v25 = vld [vmem:[#allocation7 + $0x38] sm:$0xff]  }
  0x62   :  { %1283 = vmatpush3.bf16.msra.mxu1 %v1359_v21  ;;  %v1384_v21 = vld [vmem:[#allocation7 + $0x70] sm:$0xff]  }
  0x63   :  { %1284 = vmatprep.subr.bf16.mxu1 %v1362_v28 }
  0x64   :  { %1199 = vmatpush3.bf16.msra.mxu0 %v1361_v27  ;;  %v1730_v27 = vld [vmem:[#allocation8] sm:$0xff]  }
  0x65   :  { %1200 = vmatprep.subr.bf16.mxu0 %v1363_v29 }
  0x66   :  { %1285 = vmatpush3.bf16.msra.mxu1 %v1362_v28 }
  0x67   :  { %1286 = vmatprep.subr.bf16.mxu1 %v1365_v43 }
  0x68   :  { %1201 = vmatpush3.bf16.msra.mxu0 %v1364_v37 }
  0x69   :  { %1224 = vmatprep.subr.bf16.mxu0 %v1366_v2 }
  0x6a   :  { %1287 = vmatpush3.bf16.msra.mxu1 %v1365_v43 }
  0x6b   :  { %1132 = vmatmul.mubr.msk.bf16.vlgmr.msra.gmra.mrb[0].mxu0 %vm1679_vm6, %v1131_v59  ;;  %1292 = vmatprep.subr.bf16.mxu1 %v1368_v4 }
  0x6c   :  { %427 = vmatprep.mubr.bf16.mxu0 %v1712_v60  ;;  %1225 = vmatpush3.bf16.msra.mxu0 %v1367_v3 }
  0x6d   :  { %1289 = vmatmul.mubr.msk.bf16.vlgmr.msra.gmra.mrb[0].mxu1 %vm1702_vm8, %v1140_v62  ;;  %1226 = vmatprep.subr.bf16.mxu0 %v1369_v5 }
  0x6e   :  { %1293 = vmatpush3.bf16.msra.mxu1 %v1368_v4 }
  0x6f   :  { %1294 = vmatprep.subr.bf16.mxu1 %v1371_v7 }
  0x70   :  { %1227 = vmatpush3.bf16.msra.mxu0 %v1370_v6 }
  0x71   :  { %1228 = vmatprep.subr.bf16.mxu0 %v1372_v8 }
  0x72   :  { %1295 = vmatpush3.bf16.msra.mxu1 %v1371_v7 }
  0x73   :  { %1135 = vmatmul.mubr.msk.bf16.gmra.mrb[4].mxu0 %vm1715_vm10, %v1134_v1  ;;  %1296 = vmatprep.subr.bf16.mxu1 %v1374_v10 }
  0x74   :  { %1229 = vmatpush3.bf16.msra.mxu0 %v1373_v9 }
  0x75   :  { %1230 = vmatprep.subr.bf16.mxu0 %v1375_v11 }
  0x76   :  { %1297 = vmatpush3.bf16.msra.mxu1 %v1374_v10 }
  0x77   :  { %1298 = vmatprep.subr.bf16.mxu1 %v1377_v14 }
  0x78   :  { %1231 = vmatpush3.bf16.msra.mxu0 %v1376_v12 }
  0x79   :  { %1232 = vmatprep.subr.bf16.mxu0 %v1378_v15 }
  0x7a   :  { %1299 = vmatpush3.bf16.msra.mxu1 %v1377_v14 }
  0x7b   :  { %1300 = vmatprep.subr.bf16.mxu1 %v1380_v17 }
  0x7c   :  { %1233 = vmatpush3.bf16.msra.mxu0 %v1379_v16 }
  0x7d   :  { %1234 = vmatprep.subr.bf16.mxu0 %v1381_v18  ;;  %v92_v18 = vld [vmem:[%s1824_s4] sm:$0x1] }
  0x7e   :  { %1301 = vmatpush3.bf16.msra.mxu1 %v1380_v17 }
  0x7f   :  { %1302 = vmatprep.subr.bf16.mxu1 %v1383_v20 }
  0x80   :  { %1235 = vmatpush3.bf16.msra.mxu0 %v1382_v19  ;;  %v1737_v19 = vsub.s32 0, %v1654_v13  ;;  %v1393_v13 = vld [vmem:[#allocation8 + $0x18] sm:$0xff]  }
  0x81   :  { %1236 = vmatprep.subr.bf16.mxu0 %v1384_v21 }
  0x82   :  { %1303 = vmatpush3.bf16.msra.mxu1 %v1383_v20 }
  0x83   :  { %1304 = vmatprep.subr.bf16.mxu1 %v1386_v23 }
  0x84   :  { %1237 = vmatpush3.bf16.msra.mxu0 %v1385_v22  ;;  %v93_v22 = vld [vmem:[%s1825_s5] sm:$0x1] }
  0x85   :  { %1238 = vmatprep.subr.bf16.mxu0 %v1387_v24 }
  0x86   :  { %1305 = vmatpush3.bf16.msra.mxu1 %v1386_v23 }
  0x87   :  { %1306 = vmatprep.subr.bf16.mxu1 %v1389_v26 }
  0x88   :  { %1239 = vmatpush3.bf16.msra.mxu0 %v1388_v25 }
  0x89   :  { %1312 = vmatprep.subr.bf16.mxu0 %v1730_v27 }
  0x8a   :  { %1307 = vmatpush3.bf16.msra.mxu1 %v1389_v26 }
 0x13e   :  { %v1202_v28 = vpop.f32.mrb[0].mxu0 }
 0x13f   :  { %v1203_v29 = vpop.f32.mrb[1].mxu0 }
 0x140   :  { %v1204_v30 = vadd.f32 %v1203_v29, %v1202_v28  ;;  %v1205_v31 = vpop.f32.mrb[2].mxu0  ;;  %v1290_v32 = vpop.f32.mrb[0].mxu1 }
 0x141   :  { %v1206_v33 = vpop.f32.mrb[3].mxu0  ;;  %v470_v34 = vpop.f32.mrb[1].mxu1 }
 0x142   :  { %v1207_v35 = vadd.f32 %v1206_v33, %v1205_v31  ;;  %v471_v36 = vadd.f32 %v1204_v30, %v470_v34  ;;  %v1291_v37 = vpop.f32.mrb[2].mxu1 }
 0x143   :  { %v473_v38 = vpop.f32.mrb[3].mxu1 }
 0x144   :  { %v474_v39 = vadd.f32 %v1207_v35, %v473_v38  ;;  %v495_v40 = vmul.f32 %v471_v36, %v471_v36 }
 0x146   :  { %v485_v41 = vadd.f32 %v474_v39, %v471_v36  ;;  %v496_v42 = vmul.f32 %v474_v39, %v474_v39  ;;  %v1208_v43 = vpop.f32.mrb[4].mxu0 }
 0x147   :  { %v1209_v45 = vpop.f32.mrb[5].mxu0 }
 0x148   :  { %v499_v47 = vadd.f32 %v496_v42, %v495_v40  ;;  %v1210_v48 = vadd.f32 %v1209_v45, %v1208_v43  ;;  %v1211_v49 = vpop.f32.mrb[6].mxu0 }
 0x149   :  { %v1212_v51 = vpop.f32.mrb[7].mxu0 }
 0x14a   :  { %v479_v52 = vadd.f32 %v1290_v32, %v1210_v48  ;;  %v1213_v53 = vadd.f32 %v1212_v51, %v1211_v49 }
 0x14c   :  { %v486_v54 = vadd.f32 %v485_v41, %v479_v52  ;;  %v497_v56 = vmul.f32 %v479_v52, %v479_v52  ;;  %v482_v57 = vadd.f32 %v1291_v37, %v1213_v53 }
 0x14e   :  { %v500_v58 = vadd.f32 %v499_v47, %v497_v56  ;;  %v487_v59 = vadd.f32 %v486_v54, %v482_v57  ;;  %v498_v62 = vmul.f32 %v482_v57, %v482_v57 }
 0x150   :  { %v488_v63 = vrot.slane %v487_v59, 4  ;;  %v501_v0 = vadd.f32 %v500_v58, %v498_v62 }
 0x152   :  { %v489_v1 = vadd.f32 %v488_v63, %v487_v59  ;;  %v502_v2 = vrot.slane %v501_v0, 4 }
 0x154   :  { %v490_v3 = vrot.slane %v489_v1, 2  ;;  %v503_v4 = vadd.f32 %v502_v2, %v501_v0  ;;  %v1391_v0 = vld [vmem:[#allocation8 + $0x8] sm:$0xff]  }
 0x156   :  { %v491_v5 = vadd.f32 %v490_v3, %v489_v1  ;;  %v504_v6 = vrot.slane %v503_v4, 2 }
 0x158   :  { %v492_v7 = vrot.slane %v491_v5, 1  ;;  %v505_v8 = vadd.f32 %v504_v6, %v503_v4 }
 0x15a   :  { %v493_v9 = vadd.f32 %v492_v7, %v491_v5  ;;  %v506_v10 = vrot.slane %v505_v8, 1  ;;  %v1392_v5 = vld [vmem:[#allocation8 + $0x10] sm:$0xff]  }
 0x15c   :  { %v494_v11 = vmul.f32 0.03125, %v493_v9  ;;  %v507_v12 = vadd.f32 %v506_v10, %v505_v8 }
 0x15e   :  { %v508_v14 = vmul.f32 0.03125, %v507_v12  ;;  %v509_v15 = vmul.f32 %v494_v11, %v494_v11 }
 0x160   :  { %v510_v16 = vsub.f32 %v508_v14, %v509_v15 }
 0x162   :  { %v511_v17 = vadd.f32 1e-05, %v510_v16 }
 0x164   :  { %1398 = vrsqrt.f32 %v511_v17 }
 0x16e   :  { %v1399_v20 = vpop.eup %1398 }
 0x16f   :  { %v513_v21 = vmul.f32 %v1399_v20, %v92_v18 }
 0x171   :  { %v514_v23 = vmul.f32 %v513_v21, %v494_v11  ;;  %v520_v24 = vrot.slane %v513_v21, %v1737_v19 }
 0x173   :  { %v515_v25 = vsub.f32 %v93_v22, %v514_v23  ;;  %v525_v26 = vmul.f32 %v520_v24, %v482_v57  ;;  %v522_v28 = vmul.f32 %v520_v24, %v471_v36  ;;  %v523_v29 = vmul.f32 %v520_v24, %v474_v39 }
 0x174   :  { %v524_v30 = vmul.f32 %v520_v24, %v479_v52 }
 0x175   :  { %v530_v31 = vrot.slane %v515_v25, %v1737_v19 }
 0x177   :  { %v535_v32 = vadd.f32 %v530_v31, %v525_v26  ;;  %v532_v33 = vadd.f32 %v530_v31, %v522_v28  ;;  %v533_v34 = vadd.f32 %v530_v31, %v523_v29  ;;  %v534_v35 = vadd.f32 %v530_v31, %v524_v30 }
 0x179   :  { %v539_v37 = vmax.f32 %v535_v32, 0.0  ;;  %v536_v38 = vmax.f32 %v532_v33, 0.0  ;;  %v537_v40 = vmax.f32 %v533_v34, 0.0  ;;  %v538_v41 = vmax.f32 %v534_v35, 0.0 }
 0x17b   :  { %v543_v42 = vrot.slane %v539_v37, 7  ;;  %v555_v43 = vrot.slane %v539_v37, 1  ;;  %v540_v45 = vrot.slane %v536_v38, 7  ;;  %v541_v47 = vrot.slane %v537_v40, 7 }
 0x17c   :  { %v565_v48 = vpack.c.bf16 %v537_v40, %v536_v38  ;;  %v552_v49 = vrot.slane %v536_v38, 1  ;;  %v553_v51 = vrot.slane %v537_v40, 1  ;;  %v554_v36 = vrot.slane %v538_v41, 1 }
 0x17d   :  { %v546_v39 = vsel %vm163_vm0, %v540_v45, %v541_v47  ;;  %v547_v52 = vsel %vm163_vm0, %v543_v42, %v540_v45  ;;  %v568_v53 = vpack.c.bf16 %v539_v37, %v538_v41  ;;  %v542_v54 = vrot.slane %v538_v41, 7 }
 0x17e   :  { %794 = vmatprep.mubr.bf16.mxu0 %v565_v48  ;;  %v1167_v56 = vpack.c.bf16 %v546_v39, %v547_v52  ;;  %v557_v57 = vsel %vm180_vm1, %v553_v51, %v554_v36  ;;  %v558_v58 = vsel %vm180_vm1, %v552_v49, %v553_v51  ;;  %v556_v59 = vsel %vm180_vm1, %v554_v36, %v555_v43 }
 0x17f   :  { %v1173_v62 = vpack.c.bf16 %v557_v57, %v558_v58  ;;  %v559_v63 = vsel %vm180_vm1, %v555_v43, %v552_v49  ;;  %v544_v1 = vsel %vm163_vm0, %v542_v54, %v543_v42  ;;  %v545_v2 = vsel %vm163_vm0, %v541_v47, %v542_v54 }
 0x180   :  { %1168 = vmatmul.mubr.msk.bf16.vlgmr.msra.gmra.mrb[8].mxu0 %vm1679_vm6, %v1167_v56  ;;  %v1176_v3 = vpack.c.bf16 %v559_v63, %v556_v59  ;;  %v1170_v4 = vpack.c.bf16 %v544_v1, %v545_v2 }
 0x181   :  { %1308 = vmatprep.mubr.msk.bf16.mxu1 %vm1690_vm7, %v1173_v62  ;;  %1313 = vmatpush3.bf16.msra.mxu0 %v1730_v27  ;;  %v1397_v27 = vld [vmem:[#allocation8 + $0x38] sm:$0xff]  }
 0x182   :  { %802 = vmatprep.mubr.bf16.mxu0 %v568_v53  ;;  %1309 = vmatmul.mubr.msk.bf16.vlgmr.msra.gmra.mrb[4].mxu1 %vm1702_vm8, %v1176_v3 }
 0x183   :  { %1314 = vmatprep.subr.bf16.mxu0 %v1391_v0 }
 0x185   :  { %1315 = vmatpush3.bf16.msra.mxu0 %v1391_v0 }
 0x186   :  { %1316 = vmatprep.subr.bf16.mxu0 %v1392_v5 }
 0x188   :  { %1171 = vmatmul.mubr.msk.bf16.gmra.mrb[12].mxu0 %vm1715_vm10, %v1170_v4 }
 0x189   :  { %1317 = vmatpush3.bf16.msra.mxu0 %v1392_v5  ;;  %1328 = vmatprep.mubr.bf16.mxu0 %v1674_v44 }
 0x18a   :  { %1318 = vmatprep.subr.bf16.mxu0 %v1393_v13 }
 0x18d   :  { %1319 = vmatpush3.bf16.msra.mxu0 %v1393_v13 }
 0x18e   :  { %1320 = vmatprep.subr.bf16.mxu0 %v1394_v46 }
 0x191   :  { %1321 = vmatpush3.bf16.msra.mxu0 %v1394_v46 }
 0x192   :  { %1322 = vmatprep.subr.bf16.mxu0 %v1395_v50 }
 0x195   :  { %1323 = vmatpush3.bf16.msra.mxu0 %v1395_v50 }
 0x196   :  { %1324 = vmatprep.subr.bf16.mxu0 %v1396_v55 }
 0x199   :  { %1325 = vmatpush3.bf16.msra.mxu0 %v1396_v55 }
 0x19a   :  { %1326 = vmatprep.subr.bf16.mxu0 %v1397_v27 }
 0x19d   :  { %1327 = vmatpush3.bf16.msra.mxu0 %v1397_v27 }
 0x1a0   :  { %1329 = vmatmul.mubr.bf16.vlgmr.msra.gmra.mrb[16].mxu0 %v1712_v60 }
 0x253   :  { %v1240_v61 = vpop.f32.mrb[8].mxu0 }
 0x254   :  { %v1241_v6 = vpop.f32.mrb[9].mxu0 }
 0x255   :  { %v1242_v7 = vadd.f32 %v1241_v6, %v1240_v61  ;;  %v1310_v44 = vpop.f32.mrb[4].mxu1  ;;  %v1243_v8 = vpop.f32.mrb[10].mxu0  ;;  %v94_v6 = vld [vmem:[%s1826_s6] sm:$0x1] }
 0x256   :  { %v845_v9 = vpop.f32.mrb[5].mxu1  ;;  %v1244_v10 = vpop.f32.mrb[11].mxu0 }
 0x257   :  { %v1771_v11 = vadd.f32 %v1242_v7, %v845_v9  ;;  %v1245_v12 = vadd.f32 %v1244_v10, %v1243_v8  ;;  %v1311_v14 = vpop.f32.mrb[6].mxu1 }
 0x258   :  { %v848_v15 = vpop.f32.mrb[7].mxu1 }
 0x259   :  { %v1773_v16 = vadd.f32 %v1245_v12, %v848_v15  ;;  %v870_v17 = vmul.f32 %v1771_v11, %v1771_v11 }
 0x25b   :  { %v860_v60 = vadd.f32 %v1773_v16, %v1771_v11  ;;  %v871_v18 = vmul.f32 %v1773_v16, %v1773_v16  ;;  %v1246_v20 = vpop.f32.mrb[12].mxu0 }
 0x25c   :  { %v1247_v21 = vpop.f32.mrb[13].mxu0 }
 0x25d   :  { %v874_v22 = vadd.f32 %v871_v18, %v870_v17  ;;  %v1248_v23 = vadd.f32 %v1247_v21, %v1246_v20  ;;  %v1249_v24 = vpop.f32.mrb[14].mxu0 }
 0x25e   :  { %v1250_v25 = vpop.f32.mrb[15].mxu0 }
 0x25f   :  { %v1781_v26 = vadd.f32 %v1310_v44, %v1248_v23  ;;  %v1251_v28 = vadd.f32 %v1250_v25, %v1249_v24 }
 0x261   :  { %v861_v29 = vadd.f32 %v860_v60, %v1781_v26  ;;  %v872_v30 = vmul.f32 %v1781_v26, %v1781_v26  ;;  %v857_v31 = vadd.f32 %v1311_v14, %v1251_v28  ;;  %v95_v14 = vld [vmem:[%s1827_s7] sm:$0x1] }
 0x263   :  { %v875_v32 = vadd.f32 %v874_v22, %v872_v30  ;;  %v862_v33 = vadd.f32 %v861_v29, %v857_v31  ;;  %v873_v34 = vmul.f32 %v857_v31, %v857_v31 }
 0x265   :  { %v863_v35 = vrot.slane %v862_v33, 4  ;;  %v876_v37 = vadd.f32 %v875_v32, %v873_v34 }
 0x267   :  { %v864_v38 = vadd.f32 %v863_v35, %v862_v33  ;;  %v877_v40 = vrot.slane %v876_v37, 4 }
 0x269   :  { %v865_v41 = vrot.slane %v864_v38, 2  ;;  %v878_v42 = vadd.f32 %v877_v40, %v876_v37 }
 0x26b   :  { %v866_v43 = vadd.f32 %v865_v41, %v864_v38  ;;  %v879_v45 = vrot.slane %v878_v42, 2 }
 0x26d   :  { %v867_v47 = vrot.slane %v866_v43, 1  ;;  %v880_v48 = vadd.f32 %v879_v45, %v878_v42 }
 0x26f   :  { %v868_v49 = vadd.f32 %v867_v47, %v866_v43  ;;  %v881_v51 = vrot.slane %v880_v48, 1 }
 0x271   :  { %v869_v36 = vmul.f32 0.03125, %v868_v49  ;;  %v882_v39 = vadd.f32 %v881_v51, %v880_v48 }
 0x273   :  { %v883_v52 = vmul.f32 0.03125, %v882_v39  ;;  %v884_v53 = vmul.f32 %v869_v36, %v869_v36  ;;  %v1330_v54 = vpop.f32.mrb[16].mxu0 }
 0x274   :  { %v1009_v56 = vpop.f32.mrb[17].mxu0  ;;  %v1036_v2 = vmul.f32 %v1330_v54, %v1330_v54 }
 0x275   :  { %v885_v57 = vsub.f32 %v883_v52, %v884_v53  ;;  %v1331_v58 = vpop.f32.mrb[18].mxu0  ;;  %v1034_v63 = vmul.f32 %v1009_v56, %v1009_v56 }
 0x276   :  { %v1012_v59 = vpop.f32.mrb[19].mxu0  ;;  %v1037_v5 = vmul.f32 %v1331_v58, %v1331_v58 }
 0x277   :  { %v886_v62 = vadd.f32 1e-05, %v885_v57  ;;  %v1024_v0 = vadd.f32 %v1012_v59, %v1009_v56  ;;  %v1035_v1 = vmul.f32 %v1012_v59, %v1012_v59 }
 0x279   :  { %1400 = vrsqrt.f32 %v886_v62  ;;  %v1025_v3 = vadd.f32 %v1330_v54, %v1024_v0  ;;  %v1038_v4 = vadd.f32 %v1035_v1, %v1034_v63 }
 0x27b   :  { %v1026_v13 = vadd.f32 %v1331_v58, %v1025_v3  ;;  %v1039_v46 = vadd.f32 %v1038_v4, %v1036_v2 }
 0x27d   :  { %v1027_v50 = vrot.slane %v1026_v13, 4  ;;  %v1040_v55 = vadd.f32 %v1039_v46, %v1037_v5 }
 0x27f   :  { %v1028_v27 = vadd.f32 %v1027_v50, %v1026_v13  ;;  %v1041_v61 = vrot.slane %v1040_v55, 4 }
 0x281   :  { %v1029_v7 = vrot.slane %v1028_v27, 2  ;;  %v1042_v44 = vadd.f32 %v1041_v61, %v1040_v55 }
 0x283   :  { %v1401_v8 = vpop.eup %1400  ;;  %v1030_v9 = vadd.f32 %v1029_v7, %v1028_v27  ;;  %v1043_v10 = vrot.slane %v1042_v44, 2 }
 0x284   :  { %v888_v12 = vmul.f32 %v1401_v8, %v94_v6 }
 0x285   :  { %v1031_v15 = vrot.slane %v1030_v9, 1  ;;  %v1044_v17 = vadd.f32 %v1043_v10, %v1042_v44 }
 0x286   :  { %v889_v60 = vmul.f32 %v888_v12, %v869_v36  ;;  %v895_v18 = vrot.slane %v888_v12, %v1737_v19 }
 0x287   :  { %v1032_v20 = vadd.f32 %v1031_v15, %v1030_v9  ;;  %v1045_v21 = vrot.slane %v1044_v17, 1 }
 0x288   :  { %v890_v22 = vsub.f32 %v95_v14, %v889_v60  ;;  %v900_v23 = vmul.f32 %v895_v18, %v857_v31  ;;  %v898_v24 = vmul.f32 %v895_v18, %v1773_v16  ;;  %v897_v25 = vmul.f32 %v895_v18, %v1771_v11  ;;  %v96_v16 = vld [vmem:[%s1828_s8] sm:$0x1]  ;;  %s1531_s8 = smov [#allocation10]  }
 0x289   :  { %v1033_v28 = vmul.f32 0.03125, %v1032_v20  ;;  %v1046_v29 = vadd.f32 %v1045_v21, %v1044_v17  ;;  %v899_v30 = vmul.f32 %v895_v18, %v1781_v26  ;;  %v97_v26 = vld [vmem:[%s1829_s9] sm:$0x1]  ;;  %s1092_s13 = sshll.u32 %s1531_s8, 4  ;;  %s1093_s13 = int_to_ptr.vmem [resolvable:$true] %s1092_s13 }
 0x28a   :  { %v905_v32 = vrot.slane %v890_v22, %v1737_v19  ;;  %s1492_s9 = scalar_lea.vmem %s1093_s13, 512  ;;  %p1497_p5 = scmp.lt.s32.totalorder %s1093_s13, %s1093_s13 }
 0x28b   :  { %v1047_v33 = vmul.f32 0.03125, %v1046_v29  ;;  %v1048_v34 = vmul.f32 %v1033_v28, %v1033_v28  ;;  %p1493_p4 = scmp.ne.s32.totalorder %s1093_s13, %s1492_s9  ;;  %p1498_p6 = scmp.lt.s32.totalorder %s1492_s9, %s1492_s9 }
 0x28c   :  { %v910_v35 = vadd.f32 %v905_v32, %v900_v23  ;;  %v908_v37 = vadd.f32 %v905_v32, %v898_v24  ;;  %v907_v38 = vadd.f32 %v905_v32, %v897_v25  ;;  %v909_v40 = vadd.f32 %v905_v32, %v899_v30 }
 0x28d   :  { %v1049_v41 = vsub.f32 %v1047_v33, %v1048_v34  ;;  %p1499_p7 = por %p1498_p6, %p1497_p5 }
 0x28f   :  { %v1050_v42 = vadd.f32 1e-05, %v1049_v41  ;;  %p1500_p8 = pnand %p1499_p7, %p1493_p4 }
 0x291   :  { %1402 = vrsqrt.f32 %v1050_v42 }
 0x29b   :  { %v1403_v11 = vpop.eup %1402 }
 0x29c   :  { %v1052_v31 = vmul.f32 %v1403_v11, %v96_v16 }
 0x29e   :  { %v1053_v43 = vmul.f32 %v1052_v31, %v1033_v28  ;;  %v1059_v45 = vrot.slane %v1052_v31, %v1737_v19 }
 0x2a0   :  { %v1054_v47 = vsub.f32 %v97_v26, %v1053_v43  ;;  %v1062_v48 = vmul.f32 %v1059_v45, %v1012_v59  ;;  %v1061_v49 = vmul.f32 %v1059_v45, %v1009_v56  ;;  %v1063_v51 = vmul.f32 %v1330_v54, %v1059_v45 }
 0x2a1   :  { %v1064_v36 = vmul.f32 %v1331_v58, %v1059_v45 }
 0x2a2   :  { %v1069_v39 = vrot.slane %v1054_v47, %v1737_v19 }
 0x2a4   :  { %v1072_v52 = vadd.f32 %v1069_v39, %v1062_v48  ;;  %v1071_v53 = vadd.f32 %v1069_v39, %v1061_v49  ;;  %v1073_v57 = vadd.f32 %v1069_v39, %v1063_v51  ;;  %v1074_v62 = vadd.f32 %v1069_v39, %v1064_v36 }
 0x2a6   :  { %v1076_v63 = vadd.f32 %v1072_v52, %v908_v37  ;;  %v1075_v0 = vadd.f32 %v1071_v53, %v907_v38  ;;  %v1077_v1 = vadd.f32 %v1073_v57, %v909_v40  ;;  %v1078_v2 = vadd.f32 %v1074_v62, %v910_v35 }
 0x2a8   :  { %v1080_v3 = vmax.f32 %v1076_v63, 0.0  ;;  %v1079_v4 = vmax.f32 %v1075_v0, 0.0  ;;  %v1081_v5 = vmax.f32 %v1077_v1, 0.0  ;;  %v1082_v13 = vmax.f32 %v1078_v2, 0.0 }
 0x2aa   :  { %1084 = vst [vmem:[#allocation10 + $0x8] sm:$0xff] %v1080_v3  ;;  %1083 = vst [vmem:[#allocation10] sm:$0xff] %v1079_v4 }
 0x2ab   :  { %1085 = vst [vmem:[#allocation10 + $0x10] sm:$0xff] %v1081_v5  ;;  %1086 = vst [vmem:[#allocation10 + $0x18] sm:$0xff] %v1082_v13 }
 0x2ac   :  { %1503 = shalt.err (!%p1500_p8)
}
 0x2ad   :  { %s1504_s15 = scalar_lea.hbm %s1830_s10, 512 }
 0x2ae   :  { %p1505_p9 = scmp.ne.s32.totalorder %s1830_s10, %s1504_s15  ;;  %p1508_p10 = scmp.lt.u32.totalorder %s1504_s15, %s1830_s10 }
 0x2b0   :  { %p1510_p11 = pnand %p1508_p10, %p1505_p9 }
 0x2b2   :  { %1513 = shalt.err (!%p1510_p11)
}
 0x2b3   :  { %1098 = dma.vmem_to_hbm [thread:$0]  %s1093_s13, 512, %s1830_s10, [#allocation4], %s1526_s1, %s1526_s1, %s1527_s14  }
 0x2b4   :  { %1520 = dma.done.wait [#allocation4], 512  }
 0x2b5   :  { %1521 = vsyncadd [#allocation4], 4294966784 }
 0x2b6   :  { %1102 = vsyncpa [#allocation3], 1 }
 0x2b7   :  { %1103 = vsyncpa [#allocation6], 1 }
 0x2b8   :  { %1104 = vsyncpa [#allocation9], 1 }
 0x2b9   :  { %1105 = vsyncpa [#allocation4], 1 }

</bundles_post_ra>
